<compile_context>
chip_gen: v5e
topology: v5e:2x2
jax: 0.10.0
libtpu: 0.0.40
codegen_flags: <defaults>
</compile_context>

<pallas_src>
import functools

import jax
import jax.numpy as jnp
from jax.experimental import pallas as pl
from jax.experimental.pallas import tpu as pltpu


_LANE = 128
_SUBLANE = 8


def _rggc_step_kernel(a_ref, hbf_ref, h_ref, bias_agg_ref, wmsg_ref,
                      wih_ref, whh_ref, bih_ref, bhh_n_ref,
                      out_ref, gath_ref, *, hidden_pad, num_edge_types):
    """One propagation step for one (target-row tile i, source tile k) cell.

    a_ref        [E, tile_n, tile_k]  bf16  adjacency counts (rows = targets)
    hbf_ref      [tile_k, H_pad]      bf16  node states (source slice)
    h_ref        [tile_n, H_pad]      f32   node states (target rows, GRU h)
    bias_agg_ref [tile_n, H_pad]      f32   sum_e indeg_e ⊗ b_e
    wmsg_ref     [E, H_pad, H_pad]    bf16  per-edge-type W_e^T
    wih_ref      [H_pad, 3*H_pad]     bf16  [W_ir^T | W_iz^T | W_in^T]
    whh_ref      [H_pad, 3*H_pad]     bf16  [W_hr^T | W_hz^T | W_hn^T]
    bih_ref      [1, 3*H_pad]         f32   [b_ir+b_hr | b_iz+b_hz | b_in]
    bhh_n_ref    [1, H_pad]           f32   b_hn
    out_ref      [tile_n, H_pad]      f32   new node states (target rows)
    gath_ref     [E, tile_n, H_pad]   f32   scratch: per-edge gathered sums
    """
    k = pl.program_id(1)
    nk = pl.num_programs(1)
    Hp = hidden_pad
    E = num_edge_types

    @pl.when(k == 0)
    def _():
        gath_ref[...] = jnp.zeros_like(gath_ref)

    # --- gather + scatter-sum by target: gathered_e += A[e] @ H (bf16 MXU,
    #     f32 accumulation in the VMEM scratch) -------------------------------
    hbf = hbf_ref[...]
    for e in range(E):
        gath_ref[e] += jnp.dot(a_ref[e], hbf, preferred_element_type=jnp.float32)

    # --- on the last source tile: per-edge message weights + fused GRU cell --
    @pl.when(k == nk - 1)
    def _():
        agg = bias_agg_ref[...]                      # in-degree-weighted edge biases
        for e in range(E):
            agg = agg + jnp.dot(gath_ref[e].astype(jnp.bfloat16), wmsg_ref[e],
                                preferred_element_type=jnp.float32)
        h_tile = h_ref[...]
        # torch.nn.GRUCell gate order: r, z, n
        gi = jnp.dot(agg.astype(jnp.bfloat16), wih_ref[...],
                     preferred_element_type=jnp.float32) + bih_ref[...]
        gh = jnp.dot(h_tile.astype(jnp.bfloat16), whh_ref[...],
                     preferred_element_type=jnp.float32)
        r = jax.nn.sigmoid(gi[:, 0:Hp] + gh[:, 0:Hp])
        z = jax.nn.sigmoid(gi[:, Hp:2 * Hp] + gh[:, Hp:2 * Hp])
        n = jnp.tanh(gi[:, 2 * Hp:3 * Hp]
                     + r * (gh[:, 2 * Hp:3 * Hp] + bhh_n_ref[...]))
        out_ref[...] = (1.0 - z) * n + z * h_tile


def _round_up(x, m):
    return -(-x // m) * m


def _pad2d(x, rows, cols):
    return jnp.zeros((rows, cols), x.dtype).at[: x.shape[0], : x.shape[1]].set(x)


def _pad1d(x, n):
    return jnp.zeros((n,), x.dtype).at[: x.shape[0]].set(x)


def relational_gated_graph_conv(node_states, edge_lists, params,
                                num_propagations=1):
    """Forward of RelationalGatedGraphConv (aggr='sum', eval mode).

    node_states: [N, H] float32
    edge_lists:  list (len = num_edge_types) of int32 [2, num_edges_e]
                 (row 0 = source node idx, row 1 = target node idx)
    params:      edge_w [E,H,H], edge_b [E,H], w_ih [3H,H], w_hh [3H,H],
                 b_ih [3H], b_hh [3H]   (torch layouts)
    """
    N, H = node_states.shape
    E = len(edge_lists)

    # --- tiling ----------------------------------------------------------------
    H_pad = _round_up(max(H, 1), _LANE)              # lane-dense hidden dim
    TILE_N = 256                                     # target-node rows per tile
    TILE_K_MAX = 2048                                # source nodes per K step
    if N <= TILE_N:
        N_pad = _round_up(N, 2 * _SUBLANE)           # multiple of 16
        tile_k = N_pad                               # single source tile (== full)
        tile_n = max(_SUBLANE, N_pad // 2)           # >=2 row tiles -> both v7x TCs
    else:
        tile_n = TILE_N
        tile_k = TILE_K_MAX
        # Bound the double-buffered A + h_bf blocks (~12 MiB) independent of N,
        # so the kernel fits comfortably on v7x (64 MiB VMEM) for any graph size.
        while tile_k > _LANE and 2 * 2 * tile_k * (E * tile_n + H_pad) > 12 * 2**20:
            tile_k //= 2
        N_pad = _round_up(N, max(tile_n, tile_k))
    num_i = N_pad // tile_n
    num_k = N_pad // tile_k

    # --- dense adjacency counts (A[e, t, s] = #edges s -> t) ---------------------
    # TODO(synk): for large sparse graphs replace the dense O(E*N^2) adjacency
    # streaming with a scalar-prefetch / gather (edge-list or per-tile CSR)
    # formulation; the dense path is HBM-bound on zeros for sparse graphs.
    adjs = []
    for el in edge_lists:
        src, tgt = el[0], el[1]
        adjs.append(jnp.zeros((N_pad, N_pad), jnp.float32).at[tgt, src].add(1.0))
    A = jnp.stack(adjs)                              # [E, N_pad, N_pad] f32
    deg = A.sum(axis=2)                              # [E, N_pad] in-degrees
    bias_agg = jnp.einsum("en,eh->nh", deg, params["edge_b"].astype(jnp.float32))
    bias_agg = _pad2d(bias_agg, N_pad, H_pad)        # [N_pad, H_pad] f32
    # bf16 counts are exact for per-(target,source) edge multiplicities <= 256.
    A = A.astype(jnp.bfloat16)

    # --- fused / padded parameters (bf16 weights, f32 biases) --------------------
    edge_w = params["edge_w"].astype(jnp.float32)    # [E, H, H] (out, in)
    wmsg = jnp.stack([_pad2d(edge_w[e].T, H_pad, H_pad) for e in range(E)])
    wmsg = wmsg.astype(jnp.bfloat16)                 # [E, H_pad, H_pad]

    w_ih = params["w_ih"].astype(jnp.float32)        # [3H, H], rows = r|z|n
    w_hh = params["w_hh"].astype(jnp.float32)

    def _gate_cat(w):                                # -> [H_pad, 3*H_pad] bf16
        return jnp.concatenate(
            [_pad2d(w[g * H:(g + 1) * H].T, H_pad, H_pad) for g in range(3)],
            axis=1).astype(jnp.bfloat16)

    wih_cat = _gate_cat(w_ih)
    whh_cat = _gate_cat(w_hh)

    b_ih = params["b_ih"].astype(jnp.float32).reshape(3, H)
    b_hh = params["b_hh"].astype(jnp.float32).reshape(3, H)
    bih_fused = jnp.concatenate(
        [_pad1d(b_ih[0] + b_hh[0], H_pad),           # r-gate biases pre-summed
         _pad1d(b_ih[1] + b_hh[1], H_pad),           # z-gate biases pre-summed
         _pad1d(b_ih[2], H_pad)]).reshape(1, 3 * H_pad)
    bhh_n = _pad1d(b_hh[2], H_pad).reshape(1, H_pad)

    h = _pad2d(node_states.astype(jnp.float32), N_pad, H_pad)

    kernel = functools.partial(_rggc_step_kernel, hidden_pad=H_pad,
                               num_edge_types=E)

    step = pl.pallas_call(
        kernel,
        out_shape=jax.ShapeDtypeStruct((N_pad, H_pad), jnp.float32),
        grid=(num_i, num_k),
        in_specs=[
            pl.BlockSpec((E, tile_n, tile_k), lambda i, k: (0, i, k)),   # A (bf16)
            pl.BlockSpec((tile_k, H_pad), lambda i, k: (k, 0)),          # h bf16
            pl.BlockSpec((tile_n, H_pad), lambda i, k: (i, 0)),          # h f32 tile
            pl.BlockSpec((tile_n, H_pad), lambda i, k: (i, 0)),          # bias_agg
            pl.BlockSpec((E, H_pad, H_pad), lambda i, k: (0, 0, 0)),     # wmsg
            pl.BlockSpec((H_pad, 3 * H_pad), lambda i, k: (0, 0)),       # wih_cat
            pl.BlockSpec((H_pad, 3 * H_pad), lambda i, k: (0, 0)),       # whh_cat
            pl.BlockSpec((1, 3 * H_pad), lambda i, k: (0, 0)),           # bih_fused
            pl.BlockSpec((1, H_pad), lambda i, k: (0, 0)),               # bhh_n
        ],
        out_specs=pl.BlockSpec((tile_n, H_pad), lambda i, k: (i, 0)),
        scratch_shapes=[pltpu.VMEM((E, tile_n, H_pad), jnp.float32)],
        compiler_params=pltpu.CompilerParams(
            dimension_semantics=("parallel", "arbitrary"),
            vmem_limit_bytes=48 * 1024 * 1024,
        ),
    )

    # Propagation loop outside the pallas_call: every step's row tiles need the
    # FULL updated node states from the previous step.
    # Note: padded target rows of h become nonzero after the first step (GRU of
    # zero state / zero agg); they are inert because the padded source columns
    # of A are zero and the rows are sliced off at the end.
    for _ in range(num_propagations):
        h_bf = h.astype(jnp.bfloat16)                # once per step, not per tile
        h = step(A, h_bf, h, bias_agg, wmsg, wih_cat, whh_cat, bih_fused, bhh_n)

    return h[:N, :H]


def _reference(node_states, edge_lists, params, num_propagations):
    """Pure-JAX f32 reference mirroring the PyTorch module (eval mode, sum aggr)."""
    N, H = node_states.shape
    E = len(edge_lists)
    h = node_states.astype(jnp.float32)
    edge_w = params["edge_w"].astype(jnp.float32)
    edge_b = params["edge_b"].astype(jnp.float32)
    w_ih = params["w_ih"].astype(jnp.float32)
    w_hh = params["w_hh"].astype(jnp.float32)
    b_ih = params["b_ih"].astype(jnp.float32)
    b_hh = params["b_hh"].astype(jnp.float32)
    for _ in range(num_propagations):
        agg = jnp.zeros((N, H), jnp.float32)
        for e in range(E):
            src, tgt = edge_lists[e][0], edge_lists[e][1]
            msg = h[src] @ edge_w[e].T + edge_b[e]
            agg = agg.at[tgt].add(msg)
        gi = agg @ w_ih.T + b_ih
        gh = h @ w_hh.T + b_hh
        gi_r, gi_z, gi_n = jnp.split(gi, 3, axis=1)
        gh_r, gh_z, gh_n = jnp.split(gh, 3, axis=1)
        r = jax.nn.sigmoid(gi_r + gh_r)
        z = jax.nn.sigmoid(gi_z + gh_z)
        n = jnp.tanh(gi_n + r * gh_n)
        h = (1.0 - z) * n + z * h
    return h


if __name__ == "__main__":
    key = jax.random.PRNGKey(0)
    N, H, E, NUM_EDGES, P = 16, 32, 3, 24, 2   # nodes, hidden, edge types, edges/type, props
    ks = jax.random.split(key, 13)

    node_states = jax.random.normal(ks[0], (N, H), jnp.float32)

    edge_lists = []
    for e in range(E):
        src = jax.random.randint(ks[1 + e], (NUM_EDGES,), 0, N, dtype=jnp.int32)
        tgt = jax.random.randint(ks[4 + e], (NUM_EDGES,), 0, N, dtype=jnp.int32)
        edge_lists.append(jnp.stack([src, tgt]))

    # Deterministic parameter init (xavier-ish weights, small nonzero biases to
    # exercise the bias-aggregation and GRU bias paths).
    bound = (6.0 / (H + H)) ** 0.5
    edge_w = jax.random.uniform(ks[7], (E, H, H), jnp.float32, -bound, bound)
    edge_b = jax.random.uniform(ks[10], (E, H), jnp.float32, -0.1, 0.1)
    w_ih = jax.random.uniform(ks[8], (3 * H, H), jnp.float32, -bound, bound)
    w_hh, _ = jnp.linalg.qr(jax.random.normal(ks[9], (3 * H, H), jnp.float32))
    b_ih = jax.random.uniform(ks[11], (3 * H,), jnp.float32, -0.1, 0.1)
    b_hh = jax.random.uniform(ks[12], (3 * H,), jnp.float32, -0.1, 0.1)
    params = dict(edge_w=edge_w, edge_b=edge_b,
                  w_ih=w_ih, w_hh=w_hh, b_ih=b_ih, b_hh=b_hh)

    out = relational_gated_graph_conv(node_states, edge_lists, params,
                                      num_propagations=P)
    out = jax.block_until_ready(out)
    ref = jax.block_until_ready(_reference(node_states, edge_lists, params, P))

    assert out.shape == (N, H) and out.dtype == jnp.float32
    max_err = float(jnp.max(jnp.abs(out - ref)))
    assert max_err < 1e-1, f"max abs error too large: {max_err}"
    print("KERNEL_OK")
</pallas_src>

<mosaic_0001>
module attributes {stable_mosaic.version = 11 : i64} {
  func.func @_rggc_step_kernel(%arg0: i32, %arg1: i32, %arg2: memref<3x8x16xbf16, #tpu.memory_space<vmem>>, %arg3: memref<16x128xbf16, #tpu.memory_space<vmem>>, %arg4: memref<8x128xf32, #tpu.memory_space<vmem>>, %arg5: memref<8x128xf32, #tpu.memory_space<vmem>>, %arg6: memref<3x128x128xbf16, #tpu.memory_space<vmem>>, %arg7: memref<128x384xbf16, #tpu.memory_space<vmem>>, %arg8: memref<128x384xbf16, #tpu.memory_space<vmem>>, %arg9: memref<1x384xf32, #tpu.memory_space<vmem>>, %arg10: memref<1x128xf32, #tpu.memory_space<vmem>>, %arg11: memref<8x128xf32, #tpu.memory_space<vmem>>, %arg12: memref<3x8x128xf32, #tpu.memory_space<vmem>>) attributes {dimension_semantics = [#tpu.dimension_semantics<parallel>, #tpu.dimension_semantics<arbitrary>], iteration_bounds = array<i64: 2, 1>, scalar_prefetch = 0 : i64, scratch_operands = 1 : i64, tpu.core_type = #tpu.core_type<tc>, window_params = [{transform_indices = @transform_0, window_bounds = array<i64: 3, 8, 16>}, {transform_indices = @transform_1, window_bounds = array<i64: 16, 128>}, {transform_indices = @transform_2, window_bounds = array<i64: 8, 128>}, {transform_indices = @transform_3, window_bounds = array<i64: 8, 128>}, {pipeline_mode = #tpu.pipeline_mode<synchronous>, transform_indices = @transform_4, window_bounds = array<i64: 3, 128, 128>}, {pipeline_mode = #tpu.pipeline_mode<synchronous>, transform_indices = @transform_5, window_bounds = array<i64: 128, 384>}, {pipeline_mode = #tpu.pipeline_mode<synchronous>, transform_indices = @transform_6, window_bounds = array<i64: 128, 384>}, {pipeline_mode = #tpu.pipeline_mode<synchronous>, transform_indices = @transform_7, window_bounds = array<i64: 1, 384>}, {pipeline_mode = #tpu.pipeline_mode<synchronous>, transform_indices = @transform_8, window_bounds = array<i64: 1, 128>}, {transform_indices = @transform_9, window_bounds = array<i64: 8, 128>}]} {
    %c0_i32 = arith.constant 0 : i32
    %0 = arith.cmpi eq, %arg1, %c0_i32 : i32
    %1 = arith.extui %0 : i1 to i32
    %c0_i32_0 = arith.constant 0 : i32
    %2 = arith.cmpi ne, %1, %c0_i32_0 : i32
    scf.if %2 {
      %cst_31 = arith.constant 0.000000e+00 : f32
      %34 = vector.broadcast %cst_31 : f32 to vector<3x8x128xf32>
      %c0_32 = arith.constant 0 : index
      %c0_33 = arith.constant 0 : index
      %c0_34 = arith.constant 0 : index
      %35 = vector.load %arg12[%c0_32, %c0_33, %c0_34] : memref<3x8x128xf32, #tpu.memory_space<vmem>>, vector<3x8x128xf32>
      tpu.vector_store %arg12[%c0_32, %c0_33, %c0_34], %34 {strides = array<i32>} : memref<3x8x128xf32, #tpu.memory_space<vmem>>, vector<3x8x128xf32>,
    } else {
    }
    %c0 = arith.constant 0 : index
    %c0_1 = arith.constant 0 : index
    %3 = vector.load %arg3[%c0, %c0_1] : memref<16x128xbf16, #tpu.memory_space<vmem>>, vector<16x128xbf16>
    %c0_2 = arith.constant 0 : index
    %c0_3 = arith.constant 0 : index
    %c0_4 = arith.constant 0 : index
    %4 = vector.load %arg12[%c0_2, %c0_3, %c0_4] : memref<3x8x128xf32, #tpu.memory_space<vmem>>, vector<1x8x128xf32>
    %5 = vector.shape_cast %4 : vector<1x8x128xf32> to vector<8x128xf32>
    %c0_5 = arith.constant 0 : index
    %c0_6 = arith.constant 0 : index
    %c0_7 = arith.constant 0 : index
    %6 = vector.load %arg2[%c0_5, %c0_6, %c0_7] : memref<3x8x16xbf16, #tpu.memory_space<vmem>>, vector<1x8x16xbf16>
    %7 = vector.shape_cast %6 : vector<1x8x16xbf16> to vector<8x16xbf16>
    %cst = arith.constant dense<0.000000e+00> : vector<8x128xf32>
    %8 = tpu.matmul %7, %3, %cst {dimension_numbers = #tpu.dot_dimension_numbers<[1], [0], [0], [1], [0, 0, 1, 1], [], []>} : vector<8x16xbf16>, vector<16x128xbf16>, vector<8x128xf32> -> vector<8x128xf32>
    %9 = arith.addf %5, %8 : vector<8x128xf32>
    %c0_8 = arith.constant 0 : index
    %c0_9 = arith.constant 0 : index
    %c0_10 = arith.constant 0 : index
    %10 = vector.load %arg12[%c0_8, %c0_9, %c0_10] : memref<3x8x128xf32, #tpu.memory_space<vmem>>, vector<1x8x128xf32>
    %11 = vector.shape_cast %10 : vector<1x8x128xf32> to vector<8x128xf32>
    %12 = vector.shape_cast %9 : vector<8x128xf32> to vector<1x8x128xf32>
    tpu.vector_store %arg12[%c0_8, %c0_9, %c0_10], %12 {strides = array<i32>} : memref<3x8x128xf32, #tpu.memory_space<vmem>>, vector<1x8x128xf32>,
    %c1 = arith.constant 1 : index
    %c0_11 = arith.constant 0 : index
    %c0_12 = arith.constant 0 : index
    %13 = vector.load %arg12[%c1, %c0_11, %c0_12] : memref<3x8x128xf32, #tpu.memory_space<vmem>>, vector<1x8x128xf32>
    %14 = vector.shape_cast %13 : vector<1x8x128xf32> to vector<8x128xf32>
    %c1_13 = arith.constant 1 : index
    %c0_14 = arith.constant 0 : index
    %c0_15 = arith.constant 0 : index
    %15 = vector.load %arg2[%c1_13, %c0_14, %c0_15] : memref<3x8x16xbf16, #tpu.memory_space<vmem>>, vector<1x8x16xbf16>
    %16 = vector.shape_cast %15 : vector<1x8x16xbf16> to vector<8x16xbf16>
    %cst_16 = arith.constant dense<0.000000e+00> : vector<8x128xf32>
    %17 = tpu.matmul %16, %3, %cst_16 {dimension_numbers = #tpu.dot_dimension_numbers<[1], [0], [0], [1], [0, 0, 1, 1], [], []>} : vector<8x16xbf16>, vector<16x128xbf16>, vector<8x128xf32> -> vector<8x128xf32>
    %18 = arith.addf %14, %17 : vector<8x128xf32>
    %c1_17 = arith.constant 1 : index
    %c0_18 = arith.constant 0 : index
    %c0_19 = arith.constant 0 : index
    %19 = vector.load %arg12[%c1_17, %c0_18, %c0_19] : memref<3x8x128xf32, #tpu.memory_space<vmem>>, vector<1x8x128xf32>
    %20 = vector.shape_cast %19 : vector<1x8x128xf32> to vector<8x128xf32>
    %21 = vector.shape_cast %18 : vector<8x128xf32> to vector<1x8x128xf32>
    tpu.vector_store %arg12[%c1_17, %c0_18, %c0_19], %21 {strides = array<i32>} : memref<3x8x128xf32, #tpu.memory_space<vmem>>, vector<1x8x128xf32>,
    %c2 = arith.constant 2 : index
    %c0_20 = arith.constant 0 : index
    %c0_21 = arith.constant 0 : index
    %22 = vector.load %arg12[%c2, %c0_20, %c0_21] : memref<3x8x128xf32, #tpu.memory_space<vmem>>, vector<1x8x128xf32>
    %23 = vector.shape_cast %22 : vector<1x8x128xf32> to vector<8x128xf32>
    %c2_22 = arith.constant 2 : index
    %c0_23 = arith.constant 0 : index
    %c0_24 = arith.constant 0 : index
    %24 = vector.load %arg2[%c2_22, %c0_23, %c0_24] : memref<3x8x16xbf16, #tpu.memory_space<vmem>>, vector<1x8x16xbf16>
    %25 = vector.shape_cast %24 : vector<1x8x16xbf16> to vector<8x16xbf16>
    %cst_25 = arith.constant dense<0.000000e+00> : vector<8x128xf32>
    %26 = tpu.matmul %25, %3, %cst_25 {dimension_numbers = #tpu.dot_dimension_numbers<[1], [0], [0], [1], [0, 0, 1, 1], [], []>} : vector<8x16xbf16>, vector<16x128xbf16>, vector<8x128xf32> -> vector<8x128xf32>
    %27 = arith.addf %23, %26 : vector<8x128xf32>
    %c2_26 = arith.constant 2 : index
    %c0_27 = arith.constant 0 : index
    %c0_28 = arith.constant 0 : index
    %28 = vector.load %arg12[%c2_26, %c0_27, %c0_28] : memref<3x8x128xf32, #tpu.memory_space<vmem>>, vector<1x8x128xf32>
    %29 = vector.shape_cast %28 : vector<1x8x128xf32> to vector<8x128xf32>
    %30 = vector.shape_cast %27 : vector<8x128xf32> to vector<1x8x128xf32>
    tpu.vector_store %arg12[%c2_26, %c0_27, %c0_28], %30 {strides = array<i32>} : memref<3x8x128xf32, #tpu.memory_space<vmem>>, vector<1x8x128xf32>,
    %c0_i32_29 = arith.constant 0 : i32
    %31 = arith.cmpi eq, %arg1, %c0_i32_29 : i32
    %32 = arith.extui %31 : i1 to i32
    %c0_i32_30 = arith.constant 0 : i32
    %33 = arith.cmpi ne, %32, %c0_i32_30 : i32
    scf.if %33 {
      %c0_31 = arith.constant 0 : index
      %c0_32 = arith.constant 0 : index
      %34 = vector.load %arg5[%c0_31, %c0_32] : memref<8x128xf32, #tpu.memory_space<vmem>>, vector<8x128xf32>
      %c0_33 = arith.constant 0 : index
      %c0_34 = arith.constant 0 : index
      %c0_35 = arith.constant 0 : index
      %35 = vector.load %arg12[%c0_33, %c0_34, %c0_35] : memref<3x8x128xf32, #tpu.memory_space<vmem>>, vector<1x8x128xf32>
      %36 = vector.shape_cast %35 : vector<1x8x128xf32> to vector<8x128xf32>
      %37 = arith.truncf %36 : vector<8x128xf32> to vector<8x128xbf16>
      %c0_36 = arith.constant 0 : index
      %c0_37 = arith.constant 0 : index
      %c0_38 = arith.constant 0 : index
      %38 = vector.load %arg6[%c0_36, %c0_37, %c0_38] : memref<3x128x128xbf16, #tpu.memory_space<vmem>>, vector<1x128x128xbf16>
      %39 = vector.shape_cast %38 : vector<1x128x128xbf16> to vector<128x128xbf16>
      %cst_39 = arith.constant dense<0.000000e+00> : vector<8x128xf32>
      %40 = tpu.matmul %37, %39, %cst_39 {dimension_numbers = #tpu.dot_dimension_numbers<[1], [0], [0], [1], [0, 0, 1, 1], [], []>} : vector<8x128xbf16>, vector<128x128xbf16>, vector<8x128xf32> -> vector<8x128xf32>
      %41 = arith.addf %34, %40 : vector<8x128xf32>
      %c1_40 = arith.constant 1 : index
      %c0_41 = arith.constant 0 : index
      %c0_42 = arith.constant 0 : index
      %42 = vector.load %arg12[%c1_40, %c0_41, %c0_42] : memref<3x8x128xf32, #tpu.memory_space<vmem>>, vector<1x8x128xf32>
      %43 = vector.shape_cast %42 : vector<1x8x128xf32> to vector<8x128xf32>
      %44 = arith.truncf %43 : vector<8x128xf32> to vector<8x128xbf16>
      %c1_43 = arith.constant 1 : index
      %c0_44 = arith.constant 0 : index
      %c0_45 = arith.constant 0 : index
      %45 = vector.load %arg6[%c1_43, %c0_44, %c0_45] : memref<3x128x128xbf16, #tpu.memory_space<vmem>>, vector<1x128x128xbf16>
      %46 = vector.shape_cast %45 : vector<1x128x128xbf16> to vector<128x128xbf16>
      %cst_46 = arith.constant dense<0.000000e+00> : vector<8x128xf32>
      %47 = tpu.matmul %44, %46, %cst_46 {dimension_numbers = #tpu.dot_dimension_numbers<[1], [0], [0], [1], [0, 0, 1, 1], [], []>} : vector<8x128xbf16>, vector<128x128xbf16>, vector<8x128xf32> -> vector<8x128xf32>
      %48 = arith.addf %41, %47 : vector<8x128xf32>
      %c2_47 = arith.constant 2 : index
      %c0_48 = arith.constant 0 : index
      %c0_49 = arith.constant 0 : index
      %49 = vector.load %arg12[%c2_47, %c0_48, %c0_49] : memref<3x8x128xf32, #tpu.memory_space<vmem>>, vector<1x8x128xf32>
      %50 = vector.shape_cast %49 : vector<1x8x128xf32> to vector<8x128xf32>
      %51 = arith.truncf %50 : vector<8x128xf32> to vector<8x128xbf16>
      %c2_50 = arith.constant 2 : index
      %c0_51 = arith.constant 0 : index
      %c0_52 = arith.constant 0 : index
      %52 = vector.load %arg6[%c2_50, %c0_51, %c0_52] : memref<3x128x128xbf16, #tpu.memory_space<vmem>>, vector<1x128x128xbf16>
      %53 = vector.shape_cast %52 : vector<1x128x128xbf16> to vector<128x128xbf16>
      %cst_53 = arith.constant dense<0.000000e+00> : vector<8x128xf32>
      %54 = tpu.matmul %51, %53, %cst_53 {dimension_numbers = #tpu.dot_dimension_numbers<[1], [0], [0], [1], [0, 0, 1, 1], [], []>} : vector<8x128xbf16>, vector<128x128xbf16>, vector<8x128xf32> -> vector<8x128xf32>
      %55 = arith.addf %48, %54 : vector<8x128xf32>
      %c0_54 = arith.constant 0 : index
      %c0_55 = arith.constant 0 : index
      %56 = vector.load %arg4[%c0_54, %c0_55] : memref<8x128xf32, #tpu.memory_space<vmem>>, vector<8x128xf32>
      %57 = arith.truncf %55 : vector<8x128xf32> to vector<8x128xbf16>
      %c0_56 = arith.constant 0 : index
      %c0_57 = arith.constant 0 : index
      %58 = vector.load %arg7[%c0_56, %c0_57] : memref<128x384xbf16, #tpu.memory_space<vmem>>, vector<128x384xbf16>
      %cst_58 = arith.constant dense<0.000000e+00> : vector<8x384xf32>
      %59 = tpu.matmul %57, %58, %cst_58 {dimension_numbers = #tpu.dot_dimension_numbers<[1], [0], [0], [1], [0, 0, 1, 1], [], []>} : vector<8x128xbf16>, vector<128x384xbf16>, vector<8x384xf32> -> vector<8x384xf32>
      %c0_59 = arith.constant 0 : index
      %c0_60 = arith.constant 0 : index
      %60 = vector.load %arg9[%c0_59, %c0_60] : memref<1x384xf32, #tpu.memory_space<vmem>>, vector<1x384xf32>
      %61 = vector.broadcast %60 : vector<1x384xf32> to vector<8x384xf32>
      %62 = arith.addf %59, %61 : vector<8x384xf32>
      %63 = arith.truncf %56 : vector<8x128xf32> to vector<8x128xbf16>
      %c0_61 = arith.constant 0 : index
      %c0_62 = arith.constant 0 : index
      %64 = vector.load %arg8[%c0_61, %c0_62] : memref<128x384xbf16, #tpu.memory_space<vmem>>, vector<128x384xbf16>
      %cst_63 = arith.constant dense<0.000000e+00> : vector<8x384xf32>
      %65 = tpu.matmul %63, %64, %cst_63 {dimension_numbers = #tpu.dot_dimension_numbers<[1], [0], [0], [1], [0, 0, 1, 1], [], []>} : vector<8x128xbf16>, vector<128x384xbf16>, vector<8x384xf32> -> vector<8x384xf32>
      %66 = vector.extract_strided_slice %62 {offsets = [0, 0], sizes = [8, 128], strides = [1, 1]} : vector<8x384xf32> to vector<8x128xf32>
      %67 = vector.extract_strided_slice %65 {offsets = [0, 0], sizes = [8, 128], strides = [1, 1]} : vector<8x384xf32> to vector<8x128xf32>
      %68 = arith.addf %66, %67 : vector<8x128xf32>
      %69 = arith.negf %68 : vector<8x128xf32>
      %70 = math.exp %69 : vector<8x128xf32>
      %cst_64 = arith.constant 1.000000e+00 : f32
      %71 = vector.broadcast %cst_64 : f32 to vector<8x128xf32>
      %72 = arith.addf %71, %70 : vector<8x128xf32>
      %73 = arith.divf %71, %72 : vector<8x128xf32>
      %74 = vector.extract_strided_slice %62 {offsets = [0, 128], sizes = [8, 128], strides = [1, 1]} : vector<8x384xf32> to vector<8x128xf32>
      %75 = vector.extract_strided_slice %65 {offsets = [0, 128], sizes = [8, 128], strides = [1, 1]} : vector<8x384xf32> to vector<8x128xf32>
      %76 = arith.addf %74, %75 : vector<8x128xf32>
      %77 = arith.negf %76 : vector<8x128xf32>
      %78 = math.exp %77 : vector<8x128xf32>
      %cst_65 = arith.constant 1.000000e+00 : f32
      %79 = vector.broadcast %cst_65 : f32 to vector<8x128xf32>
      %80 = arith.addf %79, %78 : vector<8x128xf32>
      %81 = arith.divf %79, %80 : vector<8x128xf32>
      %82 = vector.extract_strided_slice %62 {offsets = [0, 256], sizes = [8, 128], strides = [1, 1]} : vector<8x384xf32> to vector<8x128xf32>
      %83 = vector.extract_strided_slice %65 {offsets = [0, 256], sizes = [8, 128], strides = [1, 1]} : vector<8x384xf32> to vector<8x128xf32>
      %c0_66 = arith.constant 0 : index
      %c0_67 = arith.constant 0 : index
      %84 = vector.load %arg10[%c0_66, %c0_67] : memref<1x128xf32, #tpu.memory_space<vmem>>, vector<1x128xf32>
      %85 = vector.broadcast %84 : vector<1x128xf32> to vector<8x128xf32>
      %86 = arith.addf %83, %85 : vector<8x128xf32>
      %87 = arith.mulf %73, %86 : vector<8x128xf32>
      %88 = arith.addf %82, %87 : vector<8x128xf32>
      %89 = math.tanh %88 : vector<8x128xf32>
      %cst_68 = arith.constant 1.000000e+00 : f32
      %90 = vector.broadcast %cst_68 : f32 to vector<8x128xf32>
      %91 = arith.subf %90, %81 : vector<8x128xf32>
      %92 = arith.mulf %91, %89 : vector<8x128xf32>
      %93 = arith.mulf %81, %56 : vector<8x128xf32>
      %94 = arith.addf %92, %93 : vector<8x128xf32>
      %c0_69 = arith.constant 0 : index
      %c0_70 = arith.constant 0 : index
      %95 = vector.load %arg11[%c0_69, %c0_70] : memref<8x128xf32, #tpu.memory_space<vmem>>, vector<8x128xf32>
      tpu.vector_store %arg11[%c0_69, %c0_70], %94 {strides = array<i32>} : memref<8x128xf32, #tpu.memory_space<vmem>>, vector<8x128xf32>,
    } else {
    }
    return
  }
  func.func @transform_0(%arg0: i32, %arg1: i32) -> (i32, i32, i32) {
    %c0_i32 = arith.constant 0 : i32
    %c0_i32_0 = arith.constant 0 : i32
    return %c0_i32, %arg0, %arg1 : i32, i32, i32
  }
  func.func @transform_1(%arg0: i32, %arg1: i32) -> (i32, i32) {
    %c0_i32 = arith.constant 0 : i32
    %c0_i32_0 = arith.constant 0 : i32
    return %arg1, %c0_i32 : i32, i32
  }
  func.func @transform_2(%arg0: i32, %arg1: i32) -> (i32, i32) {
    %c0_i32 = arith.constant 0 : i32
    %c0_i32_0 = arith.constant 0 : i32
    return %arg0, %c0_i32 : i32, i32
  }
  func.func @transform_3(%arg0: i32, %arg1: i32) -> (i32, i32) {
    %c0_i32 = arith.constant 0 : i32
    %c0_i32_0 = arith.constant 0 : i32
    return %arg0, %c0_i32 : i32, i32
  }
  func.func @transform_4(%arg0: i32, %arg1: i32) -> (i32, i32, i32) {
    %c0_i32 = arith.constant 0 : i32
    %c0_i32_0 = arith.constant 0 : i32
    %c0_i32_1 = arith.constant 0 : i32
    %c0_i32_2 = arith.constant 0 : i32
    return %c0_i32, %c0_i32_0, %c0_i32_1 : i32, i32, i32
  }
  func.func @transform_5(%arg0: i32, %arg1: i32) -> (i32, i32) {
    %c0_i32 = arith.constant 0 : i32
    %c0_i32_0 = arith.constant 0 : i32
    %c0_i32_1 = arith.constant 0 : i32
    return %c0_i32, %c0_i32_0 : i32, i32
  }
  func.func @transform_6(%arg0: i32, %arg1: i32) -> (i32, i32) {
    %c0_i32 = arith.constant 0 : i32
    %c0_i32_0 = arith.constant 0 : i32
    %c0_i32_1 = arith.constant 0 : i32
    return %c0_i32, %c0_i32_0 : i32, i32
  }
  func.func @transform_7(%arg0: i32, %arg1: i32) -> (i32, i32) {
    %c0_i32 = arith.constant 0 : i32
    %c0_i32_0 = arith.constant 0 : i32
    %c0_i32_1 = arith.constant 0 : i32
    return %c0_i32, %c0_i32_0 : i32, i32
  }
  func.func @transform_8(%arg0: i32, %arg1: i32) -> (i32, i32) {
    %c0_i32 = arith.constant 0 : i32
    %c0_i32_0 = arith.constant 0 : i32
    %c0_i32_1 = arith.constant 0 : i32
    return %c0_i32, %c0_i32_0 : i32, i32
  }
  func.func @transform_9(%arg0: i32, %arg1: i32) -> (i32, i32) {
    %c0_i32 = arith.constant 0 : i32
    %c0_i32_0 = arith.constant 0 : i32
    return %arg0, %c0_i32 : i32, i32
  }
}

</mosaic_0001>

<bundles_post_ra>
// kernel: tpu_custom_call.1
= control target key start
LH: loop header
LB: loop body
LE: loop exit
PB: predicated region body
PF: predicated region fallthrough
CT: control target
= control target key end

     0   :  { %s2607_s0 = inlined_call_operand.hbm [shape: bf16[3,16,16], index: 0, kind: input, shape index: {}]   ;;  %s2608_s1 = inlined_call_operand.hbm [shape: bf16[16,128], index: 1, kind: input, shape index: {}]   ;;  %s2609_s2 = inlined_call_operand.hbm [shape: f32[16,128], index: 2, kind: input, shape index: {}]   ;;  %s2610_s3 = inlined_call_operand.hbm [shape: f32[16,128], index: 3, kind: input, shape index: {}]   ;;  %s2611_s4 = inlined_call_operand.hbm [shape: bf16[3,128,128], index: 4, kind: input, shape index: {}]   ;;  %s2612_s5 = inlined_call_operand.hbm [shape: bf16[128,384], index: 5, kind: input, shape index: {}]   ;;  %s2613_s6 = inlined_call_operand.hbm [shape: bf16[128,384], index: 6, kind: input, shape index: {}]   ;;  %s2614_s7 = inlined_call_operand.vmem [shape: f32[1,384], index: 7, kind: input, shape index: {}]   ;;  %s2615_s8 = inlined_call_operand.vmem [shape: f32[1,128], index: 8, kind: input, shape index: {}]   ;;  %s2616_s9 = inlined_call_operand.hbm [shape: f32[16,128], index: 9, kind: output, shape index: {}]  }
   0x1   :  { %2630 = sst [smem:[#allocation28_spill]] %s2607_s0 }
   0x2   :  { %2631 = sst [smem:[#allocation29_spill]] %s2608_s1 }
   0x3   :  { %2632 = sst [smem:[#allocation30_spill]] %s2609_s2 }
   0x4   :  { %2633 = sst [smem:[#allocation31_spill]] %s2611_s4 }
   0x5   :  { %2634 = sst [smem:[#allocation32_spill]] %s2612_s5 }
   0x6   :  { %2635 = sst [smem:[#allocation33_spill]] %s2615_s8 }
   0x7   :  { %2636 = sst [smem:[#allocation34_spill]] %s2616_s9 }
   0x8   :  { %14 = vsyncpa [#allocation4], 0 }
   0x9   :  { %16 = vsyncpa [#allocation4 + $0x1], 0 }
   0xa   :  { %17 = vsyncpa [#allocation7], 0 }
   0xb   :  { %18 = vsyncpa [#allocation12], 0 }
   0xc   :  { %19 = vsyncpa [#allocation5], 0 }
   0xd   :  { %21 = vsyncpa [#allocation5 + $0x1], 0  ;;  %s2375_s30 = smov 0   ;;  %s2377_s10 = smov 0  }
   0xe   :  { %s2379_s11 = smov 0   ;;  %s2381_s12 = smov 0  }
   0xf   :  { %s2383_s13 = smov 0   ;;  %s2385_s14 = smov 0  }
  0x10 LB: > { %2637 = sst [smem:[#allocation21_spill]] %s2294_s30  ;;  %s39_s15 = sadd.s32 1, %s2310_s13  ;;  %s2314_s14 = sphi %s2385_s14, %s27_s14   ;;  %s2310_s13 = sphi %s2383_s13, %s2671_s13   ;;  %s2306_s12 = sphi %s2381_s12, %s2670_s12   ;;  %s2302_s11 = sphi %s2379_s11, %s2669_s11   ;;  %s2298_s10 = sphi %s2377_s10, %s2668_s10   ;;  %s2294_s30 = sphi %s2375_s30, %s2667_s30  }
  0x11   : > { %2638 = sst [smem:[#allocation22_spill]] %s2306_s12  ;;  %s48_s16 = sadd.s32 1, %s2302_s11 }
  0x12   : > { %2639 = sst [smem:[#allocation23_spill]] %s2314_s14  ;;  %p41_p0 = scmp.ge.s32.totalorder %s39_s15, 2 }
  0x13   : > { %p55_p1 = scmp.ne.s32.totalorder %s2302_s11, %s2298_s10  ;;  %p56_p2 = scmp.eq.s32.totalorder %s2314_s14, 0 }
  0x14   : > { %s2673_s15 = smov (%p41_p0, %s39_s15), 0  ;;  %p1485_p4 = scmp.ge.s32.totalorder %s2314_s14, 2 }
  0x15   : > { %2640 = sst [smem:[#allocation24_spill]] %s2673_s15  ;;  %p57_p3 = por %p56_p2, %p55_p1 }
  0x16   : > { %s43_s17 = ssub.s32 %s2310_s13, %s2673_s15  ;;  %p1932_p6 = scmp.lt.s32.totalorder %s2314_s14, 2 }
  0x17   : > { %p46_p5 = scmp.eq.s32.totalorder %s43_s17, 0  ;;  %s359_s18 = sand.u32 1, %s2314_s14  }
  0x18   : > { %s2617_s19 = sand.u32 1, %s2302_s11   ;;  %s1486_s22 = sshll.u32 %s2310_s13, 2 }
  0x19   : > { %s2422_s20 = scalar_select %p46_p5, %s2302_s11, %s48_s16  }
  0x1a   : > { %s1875_s21 = smul.u32 12, %s2617_s19  ;;  %p2427_p7 = pnand %p1932_p6, %p57_p3 }
  0x1b   : > { %2641 = sst [smem:[#allocation25_spill]] %s2422_s20  ;;  %s2434_s16 = scalar_lea.sflag [#allocation4], %s359_s18 }
  0x1c   : > { %s2643_s0 = sld [smem:[#allocation28_spill]]  ;;  %s363_s28 = scalar_lea.vmem [#allocation3], %s1875_s21 }
  0x1d   : > { %s371_s29 = sshll.u32 %s363_s28, 4  ;;  %s2316_s17 = smov 128   ;;  %s372_s29 = int_to_ptr.vmem [resolvable:$true] %s371_s29 }
  0x1e   : > { %s2619_s19 = smov 64   ;;  %s2621_s15 = smov 4  }
  0x1f   : > { %s1479_s21 = sadd.s32 4294967294, %s2314_s14   ;;  %p61_p8 = scmp.ne.s32.totalorder %s2298_s10, %s2294_s30 }
  0x20   : > { %p274_p11 = scmp.eq.s32.totalorder %s1479_s21, 1  ;;  %p1480_p13 = scmp.ge.s32.totalorder %s2314_s14, 1 }
  0x21   : > { %p281_p3 = scmp.lt.s32.totalorder %s2314_s14, 3  ;;  %s2649_s1 = sld [smem:[#allocation29_spill]] }
  0x22   : > { %s368_s26 = scalar_lea.hbm %s2643_s0, %s1486_s22  ;;  %s2442_s22 = sadd.s32 4294967295, %s2314_s14  }
  0x23   : > { %s369_s27 = sshll.u32 %s368_s26, 4  ;;  %p62_p9 = scmp.eq.s32.totalorder %s2442_s22, 0  ;;  %s370_s27 = int_to_ptr.hbm [resolvable:$true] %s369_s27 }
  0x24   : > { %1917 = dma.hbm_to_vmem [thread:$0]  (!%p2427_p7), %s370_s27, 192, %s372_s29, %s2434_s16, %s2316_s17, %s2619_s19, %s2621_s15  }
  0x25   : > { %p268_p10 = scmp.eq.s32.totalorder %s2442_s22, 1  ;;  %p2451_p12 = por %p62_p9, %p61_p8 }
  0x26   : > { %p2463_p2 = por %p274_p11, %p61_p8  ;;  %p2471_p5 = pnand %p1480_p13, %p281_p3 }
  0x27   : > { %p2459_p0 = por %p268_p10, %p55_p1  ;;  %s295_s28 = sshll.u32 %s2649_s1, 4  ;;  %s296_s28 = int_to_ptr.hbm [resolvable:$true] %s295_s28 }
  0x28   : > { %s2647_s25 = scalar_select %p2463_p2, 1, 0 }
  0x29   : > { %s2645_s24 = scalar_select %p2459_p0, 1, 0 }
  0x2a   : > { %2648 = sst [smem:[#allocation27_spill]] %s2647_s25  ;;  %s2319_s17 = smov [#allocation6]  }
  0x2b   : > { %2646 = sst [smem:[#allocation26_spill]] %s2645_s24  ;;  %s297_s21 = sshll.u32 %s2319_s17, 4  ;;  %s298_s21 = int_to_ptr.vmem [resolvable:$true] %s297_s21 }
  0x2c   : > { %s2651_s5 = sld [smem:[#allocation32_spill]]  ;;  %p1901_p1 = pneg %p2471_p5 }
  0x2d   : > { %s2320_s27 = smov [#allocation11]   ;;  %s2653_s17 = smov 4  }
  0x2e   : > { %p2482_p6 = pnand %p1901_p1, %p62_p9  ;;  %s325_s1 = sshll.u32 %s2320_s27, 4  ;;  %s326_s1 = int_to_ptr.vmem [resolvable:$true] %s325_s1 }
  0x2f   : > { %s2654_s15 = smov 64   ;;  %s2321_s19 = smov 192  }
  0x30   : > { %1904 = dma.hbm_to_vmem [thread:$0]  (!%p2482_p6), %s296_s28, 128, %s298_s21, [#allocation7], %s2654_s15, %s2654_s15, %s2653_s17  }
  0x31   : > { %s2655_s20 = sand.u32 1, %s2302_s11   ;;  %s1488_s25 = sshll.u32 %s2310_s13, 3 }
  0x32   : > { %s323_s0 = sshll.u32 %s2651_s5, 4  ;;  %s2322_s5 = smov 12   ;;  %s324_s0 = int_to_ptr.hbm [resolvable:$true] %s323_s0 }
  0x33   : > { %1910 = dma.hbm_to_vmem [thread:$0]  (!%p2482_p6), %s324_s0, 3072, %s326_s1, [#allocation12], %s2321_s19, %s2321_s19, %s2322_s5  }
  0x34   : > { %s1487_s14 = sshll.u32 %s2655_s20, 3  ;;  %s2656_s2 = sld [smem:[#allocation30_spill]] }
  0x35   : > { %s385_s27 = scalar_lea.vmem [#allocation8], %s1487_s14  ;;  %s2657_s4 = sld [smem:[#allocation31_spill]] }
  0x36   : > { %s393_s8 = sshll.u32 %s385_s27, 4  ;;  %s2323_s1 = smov [#allocation10]   ;;  %s394_s8 = int_to_ptr.vmem [resolvable:$true] %s393_s8 }
  0x37   : > { %s311_s20 = sshll.u32 %s2323_s1, 4  ;;  %s408_s21 = scalar_lea.hbm %s2610_s3, %s1488_s25  ;;  %s312_s20 = int_to_ptr.vmem [resolvable:$true] %s311_s20 }
  0x38   : > { %s410_s1 = sshll.u32 %s408_s21, 4  ;;  %s411_s1 = int_to_ptr.hbm [resolvable:$true] %s410_s1 }
  0x3a   : > { %s389_s9 = scalar_lea.hbm %s2656_s2, %s1488_s25  ;;  %s404_s2 = scalar_lea.vmem [#allocation9], %s1487_s14 }
  0x3b   : > { %s391_s12 = sshll.u32 %s389_s9, 4  ;;  %s309_s0 = sshll.u32 %s2657_s4, 4  ;;  %s392_s12 = int_to_ptr.hbm [resolvable:$true] %s391_s12  ;;  %s310_s0 = int_to_ptr.hbm [resolvable:$true] %s309_s0 }
  0x3c   : > { %1920 = dma.hbm_to_vmem [thread:$0]  (!%p2427_p7), %s392_s12, 128, %s394_s8, %s2434_s16  }
  0x3d   : > { %s337_s9 = sshll.u32 %s2613_s6, 4  ;;  %s2324_s8 = smov [#allocation13]   ;;  %s338_s9 = int_to_ptr.hbm [resolvable:$true] %s337_s9 }
  0x3e   : > { %1907 = dma.hbm_to_vmem [thread:$0]  (!%p2482_p6), %s310_s0, 3072, %s312_s20, [#allocation7], %s2654_s15, %s2654_s15, %s2653_s17  }
  0x3f   : > { %s339_s12 = sshll.u32 %s2324_s8, 4  ;;  %s412_s4 = sshll.u32 %s404_s2, 4  ;;  %s340_s12 = int_to_ptr.vmem [resolvable:$true] %s339_s12  ;;  %s413_s4 = int_to_ptr.vmem [resolvable:$true] %s412_s4 }
  0x40   : > { %1913 = dma.hbm_to_vmem [thread:$0]  (!%p2482_p6), %s338_s9, 3072, %s340_s12, [#allocation12], %s2321_s19, %s2321_s19, %s2322_s5  }
  0x41   : > { %1923 = dma.hbm_to_vmem [thread:$0]  (!%p2427_p7), %s411_s1, 128, %s413_s4, %s2434_s16  }
  0x42   : > { %421 = sbr.rel (%p2471_p5) target bundleno = 540 (0x21c), region = 56  ;;  %s423_s17 = sand.u32 (!%p2471_p5), 1, %s2442_s22  }
  0x43   : > { %s2525_s15 = sand.u32 (!%p2471_p5), 1, %s2298_s10   ;;  %s424_s26 = scalar_lea.sflag (!%p2471_p5), [#allocation4], %s423_s17 }
  0x44   : > { %s1876_s25 = smul.u32 (!%p2471_p5), 12, %s2525_s15 }
  0x46   : > { %s427_s5 = scalar_lea.vmem (!%p2471_p5), [#allocation3], %s1876_s25 }
  0x47   : > { %2269 = dma.done.wait (%p2451_p12), %s424_s26, 192  }
  0x48   : > { %2271 = vsyncadd (%p2451_p12), %s424_s26, 4294967104 }
  0x49   : > { %2273 = dma.done.wait (%p62_p9), [#allocation7], 128  }
  0x4a   : > { %2275 = vsyncadd (%p62_p9), [#allocation7], 4294967168  ;;  %s2537_s2 = sshll.u32 %s2525_s15, 3 }
  0x4b   : > { %s442_s4 = scalar_lea.vmem [#allocation8], %s2537_s2 }
  0x4c   : > { %2277 = dma.done.wait (%p2451_p12), %s424_s26, 256  }
  0x4d   : > { %2279 = vsyncadd (%p2451_p12), %s424_s26, 4294967040  ;;  %s452_s14 = scalar_lea.vmem [#allocation9], %s2537_s2 }
  0x4e   : > { %2281 = dma.done.wait (%p62_p9), [#allocation7], 3072  }
  0x4f   : > { %2283 = vsyncadd (%p62_p9), [#allocation7], 4294964224 }
  0x50   : > { %2285 = dma.done.wait (%p62_p9), [#allocation12], 6144  }
  0x51   : > { %2287 = vsyncadd (%p62_p9), [#allocation12], 4294961152  ;;  %v1802_v0 = vld [vmem:[#allocation6] sm:$0xff]  ;;  %v525_v3 = vld [vmem:[%s427_s5] sm:$0xf]  ;;  %vm532_vm0 = vcmask 130048  }
  0x52   : > { %v1810_v1 = vld [vmem:[#allocation10 + $0x38] sm:$0xff]  ;;  %543 = vmatpush.bf16.msra.mxu0 %v1802_v0  ;;  %565 = vmatpush.bf16.msra.mxu1 %v1802_v0  ;;  %v1504_v4 = vld [vmem:[%s427_s5 + $0x4] sm:$0xf]  ;;  %v1506_v6 = vld [vmem:[%s427_s5 + $0x8] sm:$0xf]  ;;  %s2658_s29 = sld [smem:[#allocation33_spill]] }
  0x53   : > { %v1818_v2 = vld [vmem:[#allocation10 + $0x78] sm:$0xff]  ;;  %587 = vmatpush.bf16.msra.mxu2 %v1802_v0  ;;  %665 = vmatpush.bf16.msra.mxu3 %v1810_v1  ;;  %v1809_v7 = vld [vmem:[#allocation10 + $0x30] sm:$0xff]  ;;  %v1808_v10 = vld [vmem:[#allocation10 + $0x28] sm:$0xff]  ;;  %s2659_s19 = sld [smem:[#allocation22_spill]]  ;;  %s512_s12 = scalar_lea.vmem [#allocation14], %s2537_s2 }
  0x54   : > { %v1826_v5 = vld [vmem:[#allocation10 + $0xb8] sm:$0xff]  ;;  %v1817_v8 = vld [vmem:[#allocation10 + $0x70] sm:$0xff]  ;;  %v1816_v11 = vld [vmem:[#allocation10 + $0x68] sm:$0xff]  ;;  %s2660_s24 = sld [smem:[#allocation34_spill]]  ;;  %s1316_s27 = sshll.u32 %s512_s12, 4  ;;  %s1317_s27 = int_to_ptr.vmem [resolvable:$true] %s1316_s27 }
  0x55   : > { %v1825_v9 = vld [vmem:[#allocation10 + $0xb0] sm:$0xff]  ;;  %1503 = vmatmul.msk.bf16.vlgmr.msra.gmra.mxu0 %vm532_vm0, %v525_v3  ;;  %1505 = vmatmul.msk.bf16.vlgmr.msra.gmra.mxu1 %vm532_vm0, %v1504_v4  ;;  %v1824_v12 = vld [vmem:[#allocation10 + $0xa8] sm:$0xff]  ;;  %v1807_v13 = vld [vmem:[#allocation10 + $0x20] sm:$0xff]  ;;  %s1304_s21 = scalar_lea.sflag [#allocation5], %s2525_s15 }
  0x56   : > { %746 = vmatpush.bf16.msrb.mxu0 %v1818_v2  ;;  %827 = vmatpush.bf16.msrb.mxu1 %v1826_v5  ;;  %v1815_v14 = vld [vmem:[#allocation10 + $0x60] sm:$0xff]  ;;  %v1806_v16 = vld [vmem:[#allocation10 + $0x18] sm:$0xff]  ;;  %v1805_v19 = vld [vmem:[#allocation10 + $0x10] sm:$0xff] }
  0x57   : > { %1507 = vmatmul.msk.bf16.vlgmr.msra.gmra.mxu2 %vm532_vm0, %v1506_v6  ;;  %666 = vmatpush.bf16.msra.mxu3 %v1809_v7  ;;  %v1823_v15 = vld [vmem:[#allocation10 + $0xa0] sm:$0xff]  ;;  %v1814_v17 = vld [vmem:[#allocation10 + $0x58] sm:$0xff]  ;;  %v1813_v20 = vld [vmem:[#allocation10 + $0x50] sm:$0xff] }
  0x58   : > { %v1822_v18 = vld [vmem:[#allocation10 + $0x98] sm:$0xff]  ;;  %v1821_v21 = vld [vmem:[#allocation10 + $0x90] sm:$0xff]  ;;  %v1804_v22 = vld [vmem:[#allocation10 + $0x8] sm:$0xff] }
  0x59   : > { %v1812_v23 = vld [vmem:[#allocation10 + $0x48] sm:$0xff]  ;;  %v1803_v24 = vld [vmem:[#allocation10] sm:$0xff]  ;;  %v1849_v29 = vld [vmem:[#allocation11 + $0xb0] sm:$0xf0]  ;;  %s1799_s0 = sshll.u32 %s2659_s19, 3 }
  0x5a   : > { %747 = vmatpush.bf16.msrb.mxu0 %v1817_v8  ;;  %828 = vmatpush.bf16.msrb.mxu1 %v1825_v9  ;;  %v1811_v25 = vld [vmem:[#allocation10 + $0x40] sm:$0xff]  ;;  %v1820_v26 = vld [vmem:[#allocation10 + $0x88] sm:$0xff]  ;;  %v1678_v30 = vld [vmem:[#allocation11 + $0x90] sm:$0xf]  ;;  %s1314_s9 = scalar_lea.hbm %s2660_s24, %s1799_s0  ;;  %s2236_s5 = scalar_lea.hbm %s2660_s24, 16 }
  0x5b   : > { %667 = vmatpush.bf16.msra.mxu3 %v1808_v10  ;;  %v1819_v27 = vld [vmem:[#allocation10 + $0x80] sm:$0xff]  ;;  %v1690_v28 = vld [vmem:[#allocation11 + $0xa8] sm:$0xf]  ;;  %v1846_v32 = vld [vmem:[#allocation11 + $0x98] sm:$0xf0]  ;;  %s1318_s28 = sshll.u32 %s1314_s9, 4  ;;  %s1319_s28 = int_to_ptr.hbm [resolvable:$true] %s1318_s28 }
  0x5c   : > { %v1691_v31 = vor.u32 %v1849_v29, %v1690_v28  ;;  %v1848_v33 = vld [vmem:[#allocation11 + $0xac] sm:$0xf]  ;;  %v1692_v34 = vld [vmem:[#allocation11 + $0xb4] sm:$0xf0]  ;;  %v1679_v35 = vor.u32 %v1846_v32, %v1678_v30  ;;  %v1698_v38 = vld [vmem:[#allocation11 + $0xb0] sm:$0xf] }
  0x5d   : > { %v1666_v36 = vld [vmem:[#allocation11 + $0x78] sm:$0xf]  ;;  %v1695_v37 = vor.u32 %v1848_v33, %v1692_v34  ;;  %v1850_v39 = vld [vmem:[#allocation11 + $0xb8] sm:$0xf0]  ;;  %v1843_v40 = vld [vmem:[#allocation11 + $0x80] sm:$0xf0] }
  0x5e   : > { %748 = vmatpush.bf16.msrb.mxu0 %v1816_v11  ;;  %829 = vmatpush.bf16.msrb.mxu1 %v1824_v12  ;;  %v1699_v41 = vor.u32 %v1850_v39, %v1698_v38  ;;  %v1845_v42 = vld [vmem:[#allocation11 + $0x94] sm:$0xf]  ;;  %v1680_v43 = vld [vmem:[#allocation11 + $0x9c] sm:$0xf0]  ;;  %v1686_v45 = vld [vmem:[#allocation11 + $0x98] sm:$0xf]  ;;  %v1667_v51 = vor.u32 %v1843_v40, %v1666_v36 }
  0x5f   : > { %668 = vmatpush.bf16.msra.mxu3 %v1807_v13  ;;  %1011 = vmatpush.bf16.msrb.mxu2 %v1691_v31  ;;  %v1683_v44 = vor.u32 %v1845_v42, %v1680_v43  ;;  %v1847_v46 = vld [vmem:[#allocation11 + $0xa0] sm:$0xf0]  ;;  %v1786_v48 = vld [vmem:[#allocation13 + $0xa8] sm:$0xf]  ;;  %v1873_v49 = vld [vmem:[#allocation13 + $0xb0] sm:$0xf0] }
  0x60   : > { %v1687_v47 = vor.u32 %v1847_v46, %v1686_v45  ;;  %v1842_v50 = vld [vmem:[#allocation11 + $0x7c] sm:$0xf]  ;;  %v1654_v52 = vld [vmem:[#allocation11 + $0x60] sm:$0xf]  ;;  %v1840_v53 = vld [vmem:[#allocation11 + $0x68] sm:$0xf0]  ;;  %v1787_v54 = vor.u32 %v1873_v49, %v1786_v48 }
  0x61   : > { %v1668_v55 = vld [vmem:[#allocation11 + $0x84] sm:$0xf0]  ;;  %v1674_v56 = vld [vmem:[#allocation11 + $0x80] sm:$0xf]  ;;  %v1844_v57 = vld [vmem:[#allocation11 + $0x88] sm:$0xf0]  ;;  %v1655_v2 = vor.u32 %v1840_v53, %v1654_v52 }
  0x62   : > { %749 = vmatpush.bf16.msrb.mxu0 %v1815_v14  ;;  %830 = vmatpush.bf16.msrb.mxu1 %v1823_v15  ;;  %v1774_v58 = vld [vmem:[#allocation13 + $0x90] sm:$0xf]  ;;  %v1671_v59 = vor.u32 %v1842_v50, %v1668_v55  ;;  %v1870_v60 = vld [vmem:[#allocation13 + $0x98] sm:$0xf0]  ;;  %v1675_v61 = vor.u32 %v1844_v57, %v1674_v56  ;;  %v1839_v63 = vld [vmem:[#allocation11 + $0x64] sm:$0xf] }
  0x63   : > { %669 = vmatpush.bf16.msra.mxu3 %v1806_v16  ;;  %1012 = vmatpush.bf16.msrb.mxu2 %v1679_v35  ;;  %v1775_v62 = vor.u32 %v1870_v60, %v1774_v58  ;;  %v1656_v0 = vld [vmem:[#allocation11 + $0x6c] sm:$0xf0]  ;;  %v1662_v1 = vld [vmem:[#allocation11 + $0x68] sm:$0xf]  ;;  %v1841_v3 = vld [vmem:[#allocation11 + $0x70] sm:$0xf0] }
  0x64   : > { %v1762_v4 = vld [vmem:[#allocation13 + $0x78] sm:$0xf]  ;;  %v1867_v5 = vld [vmem:[#allocation13 + $0x80] sm:$0xf0]  ;;  %v1642_v6 = vld [vmem:[#allocation11 + $0x48] sm:$0xf]  ;;  %v1659_v8 = vor.u32 %v1839_v63, %v1656_v0  ;;  %v1663_v10 = vor.u32 %v1841_v3, %v1662_v1 }
  0x65   : > { %v1837_v7 = vld [vmem:[#allocation11 + $0x50] sm:$0xf0]  ;;  %v1763_v9 = vor.u32 %v1867_v5, %v1762_v4  ;;  %v1836_v11 = vld [vmem:[#allocation11 + $0x4c] sm:$0xf]  ;;  %v1644_v12 = vld [vmem:[#allocation11 + $0x54] sm:$0xf0] }
  0x66   : > { %750 = vmatpush.bf16.msrb.mxu0 %v1814_v17  ;;  %831 = vmatpush.bf16.msrb.mxu1 %v1822_v18  ;;  %v1643_v13 = vor.u32 %v1837_v7, %v1642_v6  ;;  %v1630_v14 = vld [vmem:[#allocation11 + $0x30] sm:$0xf]  ;;  %v1834_v15 = vld [vmem:[#allocation11 + $0x38] sm:$0xf0]  ;;  %v1647_v18 = vor.u32 %v1836_v11, %v1644_v12  ;;  %v1872_v35 = vld [vmem:[#allocation13 + $0xac] sm:$0xf] }
  0x67   : > { %670 = vmatpush.bf16.msra.mxu3 %v1805_v19  ;;  %1013 = vmatpush.bf16.msrb.mxu2 %v1667_v51  ;;  %v1650_v33 = vld [vmem:[#allocation11 + $0x50] sm:$0xf]  ;;  %v1838_v34 = vld [vmem:[#allocation11 + $0x58] sm:$0xf0]  ;;  %v1750_v38 = vld [vmem:[#allocation13 + $0x60] sm:$0xf] }
  0x68   : > { %v1651_v36 = vor.u32 %v1838_v34, %v1650_v33  ;;  %v1864_v39 = vld [vmem:[#allocation13 + $0x68] sm:$0xf0]  ;;  %v1833_v42 = vld [vmem:[#allocation11 + $0x34] sm:$0xf]  ;;  %v1632_v43 = vld [vmem:[#allocation11 + $0x3c] sm:$0xf0] }
  0x69   : > { %v1635_v45 = vor.u32 %v1833_v42, %v1632_v43  ;;  %v1835_v46 = vld [vmem:[#allocation11 + $0x40] sm:$0xf0]  ;;  %v1776_v48 = vld [vmem:[#allocation13 + $0x9c] sm:$0xf0]  ;;  %v1738_v51 = vld [vmem:[#allocation13 + $0x48] sm:$0xf] }
  0x6a   : > { %751 = vmatpush.bf16.msrb.mxu0 %v1813_v20  ;;  %832 = vmatpush.bf16.msrb.mxu1 %v1821_v21  ;;  %v1631_v21 = vor.u32 %v1834_v15, %v1630_v14  ;;  %v1861_v52 = vld [vmem:[#allocation13 + $0x50] sm:$0xf0]  ;;  %v1620_v55 = vld [vmem:[#allocation11 + $0x24] sm:$0xf0]  ;;  %v1626_v57 = vld [vmem:[#allocation11 + $0x20] sm:$0xf] }
  0x6b   : > { %671 = vmatpush.bf16.msra.mxu3 %v1804_v22  ;;  %1014 = vmatpush.bf16.msrb.mxu2 %v1655_v2  ;;  %v1618_v22 = vld [vmem:[#allocation11 + $0x18] sm:$0xf]  ;;  %v1739_v53 = vor.u32 %v1861_v52, %v1738_v51  ;;  %v1832_v58 = vld [vmem:[#allocation11 + $0x28] sm:$0xf0]  ;;  %v1858_v63 = vld [vmem:[#allocation13 + $0x38] sm:$0xf0] }
  0x6c   : > { %v1627_v60 = vor.u32 %v1832_v58, %v1626_v57  ;;  %v1827_v2 = vld [vmem:[#allocation11 + $0x4] sm:$0xf]  ;;  %v1608_v3 = vld [vmem:[#allocation11 + $0xc] sm:$0xf0]  ;;  %v1874_v6 = vld [vmem:[#allocation13 + $0xb8] sm:$0xf0] }
  0x6d   : > { %v1611_v4 = vor.u32 %v1827_v2, %v1608_v3  ;;  %v1794_v5 = vld [vmem:[#allocation13 + $0xb0] sm:$0xf]  ;;  %v1855_v14 = vld [vmem:[#allocation13 + $0x20] sm:$0xf0]  ;;  %v1758_v33 = vld [vmem:[#allocation13 + $0x68] sm:$0xf] }
  0x6e   : > { %752 = vmatpush.bf16.msrb.mxu0 %v1812_v23  ;;  %833 = vmatpush.bf16.msrb.mxu1 %v1820_v26  ;;  %v1831_v23 = vld [vmem:[#allocation11 + $0x20] sm:$0xf0]  ;;  %v1606_v26 = vld [vmem:[#allocation11] sm:$0xf]  ;;  %v1795_v7 = vor.u32 %v1874_v6, %v1794_v5  ;;  %v1752_v12 = vld [vmem:[#allocation13 + $0x6c] sm:$0xf0] }
  0x6f   : > { %672 = vmatpush.bf16.msra.mxu3 %v1803_v24  ;;  %1015 = vmatpush.bf16.msrb.mxu2 %v1643_v13  ;;  %v1619_v24 = vor.u32 %v1831_v23, %v1618_v22  ;;  %v1714_v13 = vld [vmem:[#allocation13 + $0x18] sm:$0xf]  ;;  %v1702_v23 = vld [vmem:[#allocation13] sm:$0xf]  ;;  %v1851_v42 = vld [vmem:[#allocation13 + $0x4] sm:$0xf] }
  0x70   : > { %v1704_v43 = vld [vmem:[#allocation13 + $0xc] sm:$0xf0]  ;;  %v875_v5 = vld [vmem:[%s2614_s7] sm:$0x7]  ;;  %s2230_s1 = sshra.s32 %s1319_s28, 4  ;;  %s2231_s1 = int_to_ptr.hbm [resolvable:$true] %s2230_s1 }
  0x71   : > { %v877_v6 = vperm.slane %v875_v5, 0  ;;  %s2232_s17 = scalar_lea.hbm %s2231_s1, 8  ;;  %p2237_p10 = scmp.lt.s32.totalorder %s2231_s1, %s2660_s24 }
  0x72   : > { %753 = vmatpush.bf16.msrb.mxu0 %v1811_v25  ;;  %834 = vmatpush.bf16.msrb.mxu1 %v1819_v27  ;;  %v1828_v27 = vld [vmem:[#allocation11 + $0x8] sm:$0xf0]  ;;  %p2233_p7 = scmp.ne.s32.totalorder %s2231_s1, %s2232_s17  ;;  %p2238_p11 = scmp.lt.s32.totalorder %s2236_s5, %s2232_s17 }
  0x73   : > { %1024 = vmatpush.bf16.msrb.mxu3 %v1695_v37  ;;  %1016 = vmatpush.bf16.msrb.mxu2 %v1631_v21  ;;  %v1607_v31 = vor.u32 %v1828_v27, %v1606_v26  ;;  %v1788_v37 = vld [vmem:[#allocation13 + $0xb4] sm:$0xf0]  ;;  %v1770_v26 = vld [vmem:[#allocation13 + $0x80] sm:$0xf]  ;;  %v1868_v27 = vld [vmem:[#allocation13 + $0x88] sm:$0xf0] }
  0x74   : > { %v1791_v40 = vor.u32 %v1872_v35, %v1788_v37  ;;  %v1740_v21 = vld [vmem:[#allocation13 + $0x54] sm:$0xf0]  ;;  %v1865_v35 = vld [vmem:[#allocation13 + $0x70] sm:$0xf0]  ;;  %v1716_v37 = vld [vmem:[#allocation13 + $0x24] sm:$0xf0]  ;;  %p2234_p8 = pnand %p2233_p7, %p2459_p0  ;;  %p2239_p12 = por %p2238_p11, %p2237_p10 }
  0x76   : > { %1037 = vmatpush.bf16.msra.mxu0 %v1699_v41  ;;  %1211 = vmatpush.bf16.msra.mxu1 %v1787_v54  ;;  %v1751_v41 = vor.u32 %v1864_v39, %v1750_v38  ;;  %v1830_v54 = vld [vmem:[#allocation11 + $0x1c] sm:$0xf]  ;;  %v1759_v38 = vor.u32 %v1865_v35, %v1758_v33  ;;  %v1746_v39 = vld [vmem:[#allocation13 + $0x50] sm:$0xf]  ;;  %p2235_p9 = pneg %p2234_p8 }
  0x77   : > { %1025 = vmatpush.bf16.msrb.mxu3 %v1683_v44  ;;  %1017 = vmatpush.bf16.msrb.mxu2 %v1619_v24  ;;  %v1638_v44 = vld [vmem:[#allocation11 + $0x38] sm:$0xf]  ;;  %v1623_v56 = vor.u32 %v1830_v54, %v1620_v55  ;;  %v1852_v24 = vld [vmem:[#allocation13 + $0x8] sm:$0xf0]  ;;  %v1853_v54 = vld [vmem:[#allocation13 + $0x10] sm:$0xf0] }
  0x78   : > { %v1639_v49 = vor.u32 %v1835_v46, %v1638_v44  ;;  %v1734_v46 = vld [vmem:[#allocation13 + $0x38] sm:$0xf]  ;;  %p2240_p13 = pnand %p2239_p12, %p2235_p9 }
  0x79   : > { %v598_v55 = vld [vmem:[%s452_s14] sm:$0xff] }
  0x7a   : > { %1038 = vmatpush.bf16.msra.mxu0 %v1687_v47  ;;  %1212 = vmatpush.bf16.msra.mxu1 %v1775_v62  ;;  %v1869_v47 = vld [vmem:[#allocation13 + $0x94] sm:$0xf]  ;;  %v1726_v62 = vld [vmem:[#allocation13 + $0x30] sm:$0xf] }
  0x7b   : > { %1026 = vmatpush.bf16.msrb.mxu3 %v1671_v59  ;;  %1018 = vmatpush.bf16.msrb.mxu2 %v1607_v31  ;;  %v1779_v50 = vor.u32 %v1869_v47, %v1776_v48  ;;  %v1866_v59 = vld [vmem:[#allocation13 + $0x7c] sm:$0xf]  ;;  %v1727_v1 = vor.u32 %v1858_v63, %v1726_v62  ;;  %v1857_v31 = vld [vmem:[#allocation13 + $0x34] sm:$0xf]  ;;  %v1859_v47 = vld [vmem:[#allocation13 + $0x40] sm:$0xf0] }
  0x7c   : > { %v1735_v48 = vor.u32 %v1859_v47, %v1734_v46 }
  0x7e   : > { %1039 = vmatpush.bf16.msra.mxu0 %v1675_v61  ;;  %1213 = vmatpush.bf16.msra.mxu1 %v1763_v9  ;;  %v1764_v61 = vld [vmem:[#allocation13 + $0x84] sm:$0xf0]  ;;  %v1829_v9 = vld [vmem:[#allocation11 + $0x10] sm:$0xf0] }
  0x7f   : > { %1027 = vmatpush.bf16.msrb.mxu3 %v1659_v8  ;;  %1224 = vmatpush.bf16.msra.mxu2 %v1791_v40  ;;  %v1767_v0 = vor.u32 %v1866_v59, %v1764_v61  ;;  %v1614_v8 = vld [vmem:[#allocation11 + $0x8] sm:$0xf]  ;;  %v1862_v40 = vld [vmem:[#allocation13 + $0x58] sm:$0xf0] }
  0x80   : > { %v1615_v11 = vor.u32 %v1829_v9, %v1614_v8  ;;  %v1747_v44 = vor.u32 %v1862_v40, %v1746_v39  ;;  %v879_v39 = vperm.slane %v875_v5, 2 }
  0x82   : > { %1040 = vmatpush.bf16.msra.mxu0 %v1663_v10  ;;  %1214 = vmatpush.bf16.msra.mxu1 %v1751_v41  ;;  %v1863_v10 = vld [vmem:[#allocation13 + $0x64] sm:$0xf] }
  0x83   : > { %1028 = vmatpush.bf16.msrb.mxu3 %v1647_v18  ;;  %1225 = vmatpush.bf16.msra.mxu2 %v1779_v50  ;;  %v1755_v15 = vor.u32 %v1863_v10, %v1752_v12  ;;  %v1871_v18 = vld [vmem:[#allocation13 + $0xa0] sm:$0xf0]  ;;  %v1856_v50 = vld [vmem:[#allocation13 + $0x28] sm:$0xf0] }
  0x86   : > { %1041 = vmatpush.bf16.msra.mxu0 %v1651_v36  ;;  %1215 = vmatpush.bf16.msra.mxu1 %v1739_v53  ;;  %v1854_v36 = vld [vmem:[#allocation13 + $0x1c] sm:$0xf]  ;;  %v1710_v53 = vld [vmem:[#allocation13 + $0x8] sm:$0xf] }
  0x87   : > { %1029 = vmatpush.bf16.msrb.mxu3 %v1635_v45  ;;  %1226 = vmatpush.bf16.msra.mxu2 %v1767_v0  ;;  %v1719_v41 = vor.u32 %v1854_v36, %v1716_v37  ;;  %v1707_v45 = vor.u32 %v1851_v42, %v1704_v43 }
  0x8a   : > { %1042 = vmatpush.bf16.msra.mxu0 %v1639_v49  ;;  %1216 = vmatpush.bf16.msra.mxu1 %v1727_v1  ;;  %v1722_v49 = vld [vmem:[#allocation13 + $0x20] sm:$0xf] }
  0x8b   : > { %1030 = vmatpush.bf16.msrb.mxu3 %v1623_v56  ;;  %1227 = vmatpush.bf16.msra.mxu2 %v1755_v15  ;;  %v1723_v52 = vor.u32 %v1856_v50, %v1722_v49  ;;  %v1711_v56 = vor.u32 %v1853_v54, %v1710_v53  ;;  %v878_v15 = vperm.slane %v875_v5, 1 }
  0x8e   : > { %1043 = vmatpush.bf16.msra.mxu0 %v1627_v60 }
  0x8f   : > { %1031 = vmatpush.bf16.msrb.mxu3 %v1611_v4 }
  0x92   : > { %1044 = vmatpush.bf16.msra.mxu0 %v1615_v11 }
  0xd2   : > { %v545_v16 = vpop.f32.mrf.mxu0  ;;  %v567_v17 = vpop.f32.mrf.mxu1 }
  0xd3   : > { %v600_v19 = vpack.c.bf16 %v545_v16, %v545_v16  ;;  %v680_v20 = vpack.c.bf16 %v567_v17, %v567_v17  ;;  %v1715_v16 = vor.u32 %v1855_v14, %v1714_v13  ;;  %v1782_v17 = vld [vmem:[#allocation13 + $0x98] sm:$0xf] }
  0xd5   : > { %673 = vmatmul.bf16.vlgmr.msra.gmra.mxu3 %v600_v19  ;;  %754 = vmatmul.bf16.vlgmr.msrb.gmra.mxu0 %v680_v20  ;;  %v1783_v19 = vor.u32 %v1871_v18, %v1782_v17  ;;  %v1860_v20 = vld [vmem:[#allocation13 + $0x4c] sm:$0xf] }
  0xd6   : > { %1237 = vmatpush.bf16.msra.mxu3 %v1795_v7  ;;  %1217 = vmatpush.bf16.msra.mxu1 %v1715_v16  ;;  %v1743_v22 = vor.u32 %v1860_v20, %v1740_v21 }
  0xd8   : > { %1228 = vmatpush.bf16.msra.mxu2 %v1743_v22 }
  0xda   : > { %v589_v25 = vpop.f32.mrf.mxu2  ;;  %v547_v29 = vpop.f32.mrf.mxu0  ;;  %1238 = vmatpush.bf16.msra.mxu3 %v1783_v19 }
  0xdb   : > { %v761_v28 = vpack.c.bf16 %v589_v25, %v589_v25  ;;  %v569_v30 = vpop.f32.mrf.mxu1  ;;  %v1703_v25 = vor.u32 %v1852_v24, %v1702_v23  ;;  %v1771_v29 = vor.u32 %v1868_v27, %v1770_v26 }
  0xdd   : > { %835 = vmatmul.bf16.vlgmr.msrb.gmra.mxu1 %v761_v28  ;;  %v2555_v28 = vld [vmem:[%s442_s4] sm:$0xff] }
  0xde   : > { %v1050_v30 = vpack.c.bf16 %v2555_v28, %v2555_v28  ;;  %1218 = vmatpush.bf16.msra.mxu1 %v1703_v25  ;;  %1239 = vmatpush.bf16.msra.mxu3 %v1771_v29 }
  0xe2   : > { %v591_v32 = vpop.f32.mrf.mxu2  ;;  %1240 = vmatpush.bf16.msra.mxu3 %v1759_v38 }
  0xe3   : > { %v1728_v32 = vld [vmem:[#allocation13 + $0x3c] sm:$0xf0] }
  0xe4   : > { %v1731_v34 = vor.u32 %v1857_v31, %v1728_v32 }
  0xe6   : > { %1229 = vmatpush.bf16.msra.mxu2 %v1731_v34  ;;  %1241 = vmatpush.bf16.msra.mxu3 %v1747_v44 }
  0xea   : > { %1230 = vmatpush.bf16.msra.mxu2 %v1719_v41  ;;  %1242 = vmatpush.bf16.msra.mxu3 %v1735_v48 }
  0xed   : > { %1219 = vmatmul.bf16.vlgmr.msra.gmra.mxu1 %v1050_v30 }
  0xee   : > { %1231 = vmatpush.bf16.msra.mxu2 %v1707_v45  ;;  %1243 = vmatpush.bf16.msra.mxu3 %v1723_v52 }
  0xf2   : > { %1244 = vmatpush.bf16.msra.mxu3 %v1711_v56 }
 0x152   : > { %v755_v51 = vpop.f32.mrf.mxu0 }
 0x158   : > { %v674_v57 = vpop.f32.mrf.mxu3 }
 0x159   : > { %v678_v58 = vadd.f32 %v674_v57, %v598_v55 }
 0x15a   : > { %v836_v59 = vpop.f32.mrf.mxu1  ;;  %v757_v60 = vpop.f32.mrf.mxu0 }
 0x15b   : > { %v759_v61 = vadd.f32 %v755_v51, %v678_v58 }
 0x15d   : > { %v840_v62 = vadd.f32 %v836_v59, %v759_v61 }
 0x15f   : > { %v842_v63 = vpack.c.bf16 %v840_v62, %v840_v62 }
 0x160   : > { %v676_v0 = vpop.f32.mrf.mxu3 }
 0x161   : > { %1019 = vmatmul.bf16.vlgmr.msrb.gmra.mxu2 %v842_v63  ;;  %1032 = vmatmul.bf16.vlgmr.msrb.gmra.mxu3 %v842_v63 }
 0x162   : > { %v838_v1 = vpop.f32.mrf.mxu1  ;;  %1045 = vmatmul.bf16.vlgmr.msra.gmra.mxu0 %v842_v63 }
 0x16a   : > { %v1220_v2 = vpop.f32.mrf.mxu1 }
 0x171   : > { %1232 = vmatmul.bf16.vlgmr.msra.gmra.mxu2 %v1050_v30  ;;  %1245 = vmatmul.bf16.vlgmr.msra.gmra.mxu3 %v1050_v30  ;;  %v1995_v30 = vld [vmem:[%s2658_s29] ss:$0 sm:$0xff] }
 0x172   : > { %v1222_v3 = vpop.f32.mrf.mxu1 }
 0x1df   : > { %v1046_v4 = vpop.f32.mrf.mxu0 }
 0x1e0   : > { %v1047_v43 = vadd.f32 %v1046_v4, %v879_v39 }
 0x1e4   : > { %v1020_v7 = vpop.f32.mrf.mxu2  ;;  %v1033_v8 = vpop.f32.mrf.mxu3 }
 0x1e5   : > { %v1021_v9 = vadd.f32 %v1020_v7, %v877_v6  ;;  %v1034_v18 = vadd.f32 %v1033_v8, %v878_v15 }
 0x1e7   : > { %v1250_v10 = vadd.f32 %v1220_v2, %v1021_v9  ;;  %v1048_v11 = vpop.f32.mrf.mxu0 }
 0x1e9   : > { %v1796_v12 = vmul.f32 -1.442695, %v1250_v10 }
 0x1eb   : > { %1996 = vpow2.f32 %v1796_v12 }
 0x1ec   : > { %v1022_v13 = vpop.f32.mrf.mxu2  ;;  %v1035_v14 = vpop.f32.mrf.mxu3 }
 0x1f1   : > { %v1997_v16 = vpop.eup %1996 }
 0x1f2   : > { %v1254_v17 = vadd.f32 1.0, %v1997_v16 }
 0x1f4   : > { %1998 = vrcp.f32 %v1254_v17  ;;  %v1233_v19 = vpop.f32.mrf.mxu2  ;;  %v1246_v20 = vpop.f32.mrf.mxu3  ;;  %v1266_v29 = vand.u32 2147483648, %v1254_v17  ;;  %v1264_v33 = vand.u32 2147483647, %v1254_v17  ;;  %vm1260_vm2 = vweird.f32 %v1254_v17 }
 0x1f5   : > { %v1270_v21 = vadd.f32 %v1233_v19, %v1034_v18  ;;  %v1294_v37 = vadd.f32 %v1995_v30, %v1246_v20 }
 0x1f6   : > { %v1267_v36 = vor.u32 1.1754944e-38, %v1266_v29  ;;  %vm1265_vm4 = vcmp.eq.f32.partialorder %v1264_v33, 8.507059e+37 }
 0x1f7   : > { %v1797_v22 = vmul.f32 -1.442695, %v1270_v21 }
 0x1f9   : > { %2000 = vpow2.f32 %v1797_v22 }
 0x1fa   : > { %v1999_v23 = vpop.eup %1998 }
 0x1fb   : > { %v1256_v24 = vmul.f32 %v1999_v23, %v1254_v17  ;;  %vm1261_vm1 = vweird.f32 %v1999_v23 }
 0x1fc   : > { %v1235_v25 = vpop.f32.mrf.mxu2  ;;  %v1248_v26 = vpop.f32.mrf.mxu3  ;;  %vm1262_vm3 = vmor %vm1260_vm2, %vm1261_vm1 }
 0x1fd   : > { %v1257_v27 = vsub.f32 1.0, %v1256_v24 }
 0x1ff   : > { %v2001_v31 = vpop.eup %2000  ;;  %v1258_v32 = vmul.f32 %v1999_v23, %v1257_v27 }
 0x200   : > { %v1274_v34 = vadd.f32 1.0, %v2001_v31 }
 0x201   : > { %v1259_v35 = vadd.f32 %v1999_v23, %v1258_v32 }
 0x202   : > { %2002 = vrcp.f32 %v1274_v34  ;;  %v1286_v47 = vand.u32 2147483648, %v1274_v34  ;;  %v1284_v49 = vand.u32 2147483647, %v1274_v34  ;;  %vm1280_vm6 = vweird.f32 %v1274_v34 }
 0x203   : > { %v1263_v38 = vsel %vm1262_vm3, %v1999_v23, %v1259_v35 }
 0x204   : > { %v1268_v40 = vsel %vm1265_vm4, %v1267_v36, %v1263_v38  ;;  %v1287_v51 = vor.u32 1.1754944e-38, %v1286_v47  ;;  %vm1285_vm8 = vcmp.eq.f32.partialorder %v1284_v49, 8.507059e+37 }
 0x205   : > { %v1295_v41 = vmul.f32 %v1294_v37, %v1268_v40 }
 0x207   : > { %v1296_v45 = vadd.f32 %v1295_v41, %v1047_v43 }
 0x208   : > { %v2003_v42 = vpop.eup %2002 }
 0x209   : > { %v1276_v44 = vmul.f32 %v2003_v42, %v1274_v34  ;;  %vm1281_vm5 = vweird.f32 %v2003_v42  ;;  %2004 = vtanh.f32 %v1296_v45 }
 0x20a   : > { %vm1282_vm7 = vmor %vm1280_vm6, %vm1281_vm5 }
 0x20b   : > { %v1277_v46 = vsub.f32 1.0, %v1276_v44 }
 0x20d   : > { %v1278_v48 = vmul.f32 %v2003_v42, %v1277_v46 }
 0x20f   : > { %v1279_v50 = vadd.f32 %v2003_v42, %v1278_v48  ;;  %v2005_v55 = vpop.eup %2004 }
 0x211   : > { %v1283_v52 = vsel %vm1282_vm7, %v2003_v42, %v1279_v50 }
 0x212   : > { %v1288_v53 = vsel %vm1285_vm8, %v1287_v51, %v1283_v52 }
 0x213   : > { %v1298_v54 = vsub.f32 1.0, %v1288_v53  ;;  %v1300_v57 = vmul.f32 %v1288_v53, %v2555_v28 }
 0x215   : > { %v1299_v56 = vmul.f32 %v2005_v55, %v1298_v54 }
 0x217   : > { %v1301_v58 = vadd.f32 %v1300_v57, %v1299_v56 }
 0x219   : > { %1302 = vst [vmem:[%s512_s12] sm:$0xff] %v1301_v58 }
 0x21a   : > { %2243 = shalt.err (!%p2240_p13)
}
 0x21b   : > { %1899 = dma.vmem_to_hbm [thread:$0]  (%p2459_p0), %s1317_s27, 128, %s1319_s28, %s1304_s21  }
 0x21c PF: > { %s2662_s15 = sld [smem:[#allocation21_spill]]  ;;  %p1925_p3 = pnand %p1485_p4, %p2463_p2 }
 0x21d   : > { %s2664_s23 = sld [smem:[#allocation23_spill]] }
 0x21e   : > { %p1926_p5 = pneg %p1925_p3 }
 0x222   : > { %s1330_s16 = sand.u32 1, %s2662_s15  }
 0x223   : > { %s1331_s22 = scalar_lea.sflag [#allocation5], %s1330_s16 }
 0x224   : > { %2289 = dma.done.wait (%p1926_p5), %s1331_s22, 128  }
 0x225   : > { %2291 = vsyncadd (%p1926_p5), %s1331_s22, 4294967168  ;;  %s27_s14 = sadd.s32 1, %s2664_s23   ;;  %s2665_s18 = sld [smem:[#allocation25_spill]] }
 0x226   : > { %p24_p1 = scmp.ge.s32.totalorder %s27_s14, 4   ;;  %s2666_s29 = sld [smem:[#allocation24_spill]] }
 0x227   : > { %s2667_s30 = smov %s2298_s10  ;;  %s2668_s10 = smov %s2302_s11 }
 0x228   : > { %s2670_s12 = smov %s2310_s13  ;;  %26 = sbr.rel (!%p24_p1) target bundleno = 16 (0x10), region = 154 }
 0x22b   : > { %s2669_s11 = smov %s2665_s18 }
 0x22c   : > { %s2671_s13 = smov %s2666_s29 }
 0x22d   :  { %1337 = vsyncpa [#allocation4], 1 }
 0x22e   :  { %1339 = vsyncpa [#allocation4 + $0x1], 1 }
 0x22f   :  { %1340 = vsyncpa [#allocation7], 1 }
 0x230   :  { %1341 = vsyncpa [#allocation12], 1 }
 0x231   :  { %1342 = vsyncpa [#allocation5], 1 }
 0x232   :  { %1344 = vsyncpa [#allocation5 + $0x1], 1 }

</bundles_post_ra>
